<compile_context>
chip_gen: v7x
topology: tpu7x:2x2x1
jax: 0.10.0
libtpu: 0.0.40
codegen_flags: <defaults>
</compile_context>

<pallas_src>
import functools

import jax
import jax.numpy as jnp
from jax.experimental import pallas as pl
from jax.experimental.pallas import tpu as pltpu

HIDDEN = 128


def _encoder_kernel(x_ref, w1_ref, b1_ref, w2_ref, b2_ref, wh_ref, bh_ref,
                    out_ref, *, out_dim):
    """Whole Encoder forward for one batch tile; all weights resident in VMEM.

    x_ref / w*_ref are bf16 (MXU-native); accumulation and elementwise math are
    f32. The fused head produces [tm, 2*out_dim]: lanes [0, out_dim) are the
    mean, lanes [out_dim, 2*out_dim) get softplus applied (scale head).
    """
    x = x_ref[...]                                                  # bf16

    # net: Linear -> ReLU -> Linear -> ReLU  (bf16 operands, f32 accumulate)
    h1 = jnp.dot(x, w1_ref[...], preferred_element_type=jnp.float32) + b1_ref[...]
    h1 = jnp.maximum(h1, 0.0).astype(jnp.bfloat16)
    h2 = jnp.dot(h1, w2_ref[...], preferred_element_type=jnp.float32) + b2_ref[...]
    h2 = jnp.maximum(h2, 0.0).astype(jnp.bfloat16)

    # fused mean||scale head: one MXU push, one lane-dense output slab
    y = jnp.dot(h2, wh_ref[...], preferred_element_type=jnp.float32) + bh_ref[...]

    # softplus (torch defaults beta=1, threshold=20), applied to scale lanes only
    sp = jnp.where(y > 20.0, y, jnp.log1p(jnp.exp(jnp.minimum(y, 20.0))))
    lane = jax.lax.broadcasted_iota(jnp.int32, y.shape, dimension=1)
    out_ref[...] = jnp.where(lane >= out_dim, sp, y).astype(out_ref.dtype)


def _choose_tm(batch, desired=512):
    """Batch tile: large (amortizes ~0.35us/step pipeline overhead), multiple of
    16 (bf16 sublane packing), capped near B//2 so the parallel grid keeps >=2
    steps (v7x megacore balance)."""
    tm = min(desired, max(16, batch // 2))
    return max(16, (tm // 16) * 16)


@functools.partial(jax.jit, static_argnames=("tm",))
def encoder_forward(x, params, *, tm=None):
    """x: [B, input_dim] float32. params: dict of transposed ([in, out]) weights."""
    B, in_dim = x.shape
    out_dim = params["wm"].shape[1]
    if tm is None:
        tm = _choose_tm(B)

    grid_m = pl.cdiv(B, tm)
    b_pad = grid_m * tm
    if b_pad != B:
        x = jnp.pad(x, ((0, b_pad - B), (0, 0)))

    # bf16 matmul operands; biases stay f32 (added to the f32 accumulators).
    x_bf = x.astype(jnp.bfloat16)
    w1 = params["w1"].astype(jnp.bfloat16)
    w2 = params["w2"].astype(jnp.bfloat16)
    wh = jnp.concatenate([params["wm"], params["ws"]], axis=1).astype(jnp.bfloat16)
    b1 = params["b1"].reshape(1, HIDDEN)
    b2 = params["b2"].reshape(1, HIDDEN)
    bh = jnp.concatenate([params["bm"], params["bs"]]).reshape(1, 2 * out_dim)

    full = lambda shape: pl.BlockSpec(shape, lambda i: (0, 0))  # resident weights

    grid_spec = pltpu.PrefetchScalarGridSpec(
        num_scalar_prefetch=0,
        grid=(grid_m,),
        in_specs=[
            pl.BlockSpec((tm, in_dim), lambda i: (i, 0)),          # x tile (bf16)
            full((in_dim, HIDDEN)), full((1, HIDDEN)),             # layer 1
            full((HIDDEN, HIDDEN)), full((1, HIDDEN)),             # layer 2
            full((HIDDEN, 2 * out_dim)), full((1, 2 * out_dim)),   # fused heads
        ],
        out_specs=pl.BlockSpec((tm, 2 * out_dim), lambda i: (i, 0)),
    )

    weight_bytes = (2 * (in_dim * HIDDEN + HIDDEN * HIDDEN + HIDDEN * 2 * out_dim)
                    + 4 * (HIDDEN + HIDDEN + 2 * out_dim))
    cost = pl.CostEstimate(
        flops=2 * b_pad * (in_dim * HIDDEN + HIDDEN * HIDDEN + HIDDEN * 2 * out_dim),
        transcendentals=b_pad * 2 * out_dim,
        bytes_accessed=b_pad * in_dim * 2 + b_pad * 2 * out_dim * 4 + weight_bytes,
    )

    fused = pl.pallas_call(
        functools.partial(_encoder_kernel, out_dim=out_dim),
        out_shape=jax.ShapeDtypeStruct((b_pad, 2 * out_dim), jnp.float32),
        grid_spec=grid_spec,
        compiler_params=pltpu.CompilerParams(
            dimension_semantics=("parallel",),
            vmem_limit_bytes=32 * 1024 * 1024,
        ),
        cost_estimate=cost,
    )(x_bf, w1, b1, w2, b2, wh, bh)

    mean = fused[:B, :out_dim]
    scale = fused[:B, out_dim:]
    return mean, scale


def init_params(key, input_dim, output_dim):
    """torch.nn.Linear-style init (U[-1/sqrt(fan_in), 1/sqrt(fan_in)]); weights
    stored as [in, out] (transposed relative to PyTorch)."""
    ks = jax.random.split(key, 8)

    def linear(kw, kb, fan_in, fan_out):
        bound = 1.0 / jnp.sqrt(fan_in)
        w = jax.random.uniform(kw, (fan_in, fan_out), jnp.float32, -bound, bound)
        b = jax.random.uniform(kb, (fan_out,), jnp.float32, -bound, bound)
        return w, b

    w1, b1 = linear(ks[0], ks[1], input_dim, HIDDEN)
    w2, b2 = linear(ks[2], ks[3], HIDDEN, HIDDEN)
    wm, bm = linear(ks[4], ks[5], HIDDEN, output_dim)
    ws, bs = linear(ks[6], ks[7], HIDDEN, output_dim)
    return dict(w1=w1, b1=b1, w2=w2, b2=b2, wm=wm, bm=bm, ws=ws, bs=bs)


def encoder_ref_f32(x, p):
    """Pure-f32 JAX reference (matches the PyTorch module arithmetic)."""
    h = jnp.maximum(x @ p["w1"] + p["b1"], 0.0)
    h = jnp.maximum(h @ p["w2"] + p["b2"], 0.0)
    mean = h @ p["wm"] + p["bm"]
    s = h @ p["ws"] + p["bs"]
    scale = jnp.where(s > 20.0, s, jnp.log1p(jnp.exp(jnp.minimum(s, 20.0))))
    return mean, scale


def encoder_ref_bf16(x, p):
    """Reference mirroring the kernel's bf16-operand / f32-accumulate arithmetic."""
    bf = jnp.bfloat16
    mm = lambda a, w: jnp.dot(a.astype(bf), w.astype(bf),
                              preferred_element_type=jnp.float32)
    h = jnp.maximum(mm(x, p["w1"]) + p["b1"], 0.0)
    h = jnp.maximum(mm(h, p["w2"]) + p["b2"], 0.0)
    mean = mm(h, p["wm"]) + p["bm"]
    s = mm(h, p["ws"]) + p["bs"]
    scale = jnp.where(s > 20.0, s, jnp.log1p(jnp.exp(jnp.minimum(s, 20.0))))
    return mean, scale


if __name__ == "__main__":
    # batch=60 deliberately exercises the padded-tail path (tm=16 -> padded to 64, grid of 4).
    batch, input_dim, output_dim = 60, 32, 8

    key = jax.random.PRNGKey(0)
    k_x, k_p = jax.random.split(key)
    x = jax.random.normal(k_x, (batch, input_dim), jnp.float32)
    params = init_params(k_p, input_dim, output_dim)

    mean, scale = encoder_forward(x, params)
    jax.block_until_ready((mean, scale))

    # Tight check against a reference that uses the same bf16/f32 arithmetic.
    m_bf, s_bf = encoder_ref_bf16(x, params)
    assert jnp.allclose(mean, m_bf, atol=1e-4, rtol=1e-4), "mean mismatch vs bf16 ref"
    assert jnp.allclose(scale, s_bf, atol=1e-4, rtol=1e-4), "scale mismatch vs bf16 ref"

    # Sanity check against the exact f32 module semantics (loose: bf16 operand rounding).
    m_f32, s_f32 = encoder_ref_f32(x, params)
    assert jnp.allclose(mean, m_f32, atol=0.1, rtol=0.1), "mean drift vs f32 ref"
    assert jnp.allclose(scale, s_f32, atol=0.1, rtol=0.1), "scale drift vs f32 ref"

    assert bool(jnp.all(jnp.isfinite(mean))) and bool(jnp.all(jnp.isfinite(scale)))
    # Softplus is non-negative; exactly 0.0 is possible only on exp underflow, so use >= 0.
    assert bool(jnp.all(scale >= 0.0))

    print("KERNEL_OK")
</pallas_src>

<mosaic_0001>
module attributes {stable_mosaic.version = 11 : i64} {
  func.func @_encoder_kernel(%arg0: i32, %arg1: memref<16x32xbf16, #tpu.memory_space<vmem>>, %arg2: memref<32x128xbf16, #tpu.memory_space<vmem>>, %arg3: memref<1x128xf32, #tpu.memory_space<vmem>>, %arg4: memref<128x128xbf16, #tpu.memory_space<vmem>>, %arg5: memref<1x128xf32, #tpu.memory_space<vmem>>, %arg6: memref<128x16xbf16, #tpu.memory_space<vmem>>, %arg7: memref<1x16xf32, #tpu.memory_space<vmem>>, %arg8: memref<16x16xf32, #tpu.memory_space<vmem>>) attributes {dimension_semantics = [#tpu.dimension_semantics<parallel>], iteration_bounds = array<i64: 4>, scalar_prefetch = 0 : i64, scratch_operands = 0 : i64, tpu.core_type = #tpu.core_type<tc>, window_params = [{transform_indices = @transform_0, window_bounds = array<i64: 16, 32>}, {pipeline_mode = #tpu.pipeline_mode<synchronous>, transform_indices = @transform_1, window_bounds = array<i64: 32, 128>}, {pipeline_mode = #tpu.pipeline_mode<synchronous>, transform_indices = @transform_2, window_bounds = array<i64: 1, 128>}, {pipeline_mode = #tpu.pipeline_mode<synchronous>, transform_indices = @transform_3, window_bounds = array<i64: 128, 128>}, {pipeline_mode = #tpu.pipeline_mode<synchronous>, transform_indices = @transform_4, window_bounds = array<i64: 1, 128>}, {pipeline_mode = #tpu.pipeline_mode<synchronous>, transform_indices = @transform_5, window_bounds = array<i64: 128, 16>}, {pipeline_mode = #tpu.pipeline_mode<synchronous>, transform_indices = @transform_6, window_bounds = array<i64: 1, 16>}, {transform_indices = @transform_7, window_bounds = array<i64: 16, 16>}]} {
    %c0 = arith.constant 0 : index
    %c0_0 = arith.constant 0 : index
    %0 = vector.load %arg1[%c0, %c0_0] : memref<16x32xbf16, #tpu.memory_space<vmem>>, vector<16x32xbf16>
    %c0_1 = arith.constant 0 : index
    %c0_2 = arith.constant 0 : index
    %1 = vector.load %arg2[%c0_1, %c0_2] : memref<32x128xbf16, #tpu.memory_space<vmem>>, vector<32x128xbf16>
    %cst = arith.constant dense<0.000000e+00> : vector<16x128xf32>
    %2 = tpu.matmul %0, %1, %cst {dimension_numbers = #tpu.dot_dimension_numbers<[1], [0], [0], [1], [0, 0, 1, 1], [], []>} : vector<16x32xbf16>, vector<32x128xbf16>, vector<16x128xf32> -> vector<16x128xf32>
    %c0_3 = arith.constant 0 : index
    %c0_4 = arith.constant 0 : index
    %3 = vector.load %arg3[%c0_3, %c0_4] : memref<1x128xf32, #tpu.memory_space<vmem>>, vector<1x128xf32>
    %4 = vector.broadcast %3 : vector<1x128xf32> to vector<16x128xf32>
    %5 = arith.addf %2, %4 : vector<16x128xf32>
    %cst_5 = arith.constant 0.000000e+00 : f32
    %6 = vector.broadcast %cst_5 : f32 to vector<16x128xf32>
    %7 = arith.maximumf %5, %6 : vector<16x128xf32>
    %8 = arith.truncf %7 : vector<16x128xf32> to vector<16x128xbf16>
    %c0_6 = arith.constant 0 : index
    %c0_7 = arith.constant 0 : index
    %9 = vector.load %arg4[%c0_6, %c0_7] : memref<128x128xbf16, #tpu.memory_space<vmem>>, vector<128x128xbf16>
    %cst_8 = arith.constant dense<0.000000e+00> : vector<16x128xf32>
    %10 = tpu.matmul %8, %9, %cst_8 {dimension_numbers = #tpu.dot_dimension_numbers<[1], [0], [0], [1], [0, 0, 1, 1], [], []>} : vector<16x128xbf16>, vector<128x128xbf16>, vector<16x128xf32> -> vector<16x128xf32>
    %c0_9 = arith.constant 0 : index
    %c0_10 = arith.constant 0 : index
    %11 = vector.load %arg5[%c0_9, %c0_10] : memref<1x128xf32, #tpu.memory_space<vmem>>, vector<1x128xf32>
    %12 = vector.broadcast %11 : vector<1x128xf32> to vector<16x128xf32>
    %13 = arith.addf %10, %12 : vector<16x128xf32>
    %cst_11 = arith.constant 0.000000e+00 : f32
    %14 = vector.broadcast %cst_11 : f32 to vector<16x128xf32>
    %15 = arith.maximumf %13, %14 : vector<16x128xf32>
    %16 = arith.truncf %15 : vector<16x128xf32> to vector<16x128xbf16>
    %c0_12 = arith.constant 0 : index
    %c0_13 = arith.constant 0 : index
    %17 = vector.load %arg6[%c0_12, %c0_13] : memref<128x16xbf16, #tpu.memory_space<vmem>>, vector<128x16xbf16>
    %cst_14 = arith.constant dense<0.000000e+00> : vector<16x16xf32>
    %18 = tpu.matmul %16, %17, %cst_14 {dimension_numbers = #tpu.dot_dimension_numbers<[1], [0], [0], [1], [0, 0, 1, 1], [], []>} : vector<16x128xbf16>, vector<128x16xbf16>, vector<16x16xf32> -> vector<16x16xf32>
    %c0_15 = arith.constant 0 : index
    %c0_16 = arith.constant 0 : index
    %19 = vector.load %arg7[%c0_15, %c0_16] : memref<1x16xf32, #tpu.memory_space<vmem>>, vector<1x16xf32>
    %20 = vector.broadcast %19 : vector<1x16xf32> to vector<16x16xf32>
    %21 = arith.addf %18, %20 : vector<16x16xf32>
    %cst_17 = arith.constant 2.000000e+01 : f32
    %22 = vector.broadcast %cst_17 : f32 to vector<16x16xf32>
    %23 = arith.cmpf ogt, %21, %22 : vector<16x16xf32>
    %cst_18 = arith.constant 2.000000e+01 : f32
    %24 = vector.broadcast %cst_18 : f32 to vector<16x16xf32>
    %25 = arith.minimumf %21, %24 : vector<16x16xf32>
    %26 = math.exp %25 : vector<16x16xf32>
    %27 = math.log1p %26 : vector<16x16xf32>
    %28 = arith.select %23, %21, %27 : vector<16x16xi1>, vector<16x16xf32>
    %29 = tpu.iota {dimensions = array<i32: 1>} : vector<16x16xi32>
    %c8_i32 = arith.constant 8 : i32
    %30 = vector.broadcast %c8_i32 : i32 to vector<16x16xi32>
    %31 = arith.cmpi sge, %29, %30 : vector<16x16xi32>
    %32 = arith.select %31, %28, %21 : vector<16x16xi1>, vector<16x16xf32>
    %c0_19 = arith.constant 0 : index
    %c0_20 = arith.constant 0 : index
    %33 = vector.load %arg8[%c0_19, %c0_20] : memref<16x16xf32, #tpu.memory_space<vmem>>, vector<16x16xf32>
    tpu.vector_store %arg8[%c0_19, %c0_20], %32 {strides = array<i32>} : memref<16x16xf32, #tpu.memory_space<vmem>>, vector<16x16xf32>,
    return
  }
  func.func @transform_0(%arg0: i32) -> (i32, i32) {
    %c0_i32 = arith.constant 0 : i32
    %c0_i32_0 = arith.constant 0 : i32
    return %arg0, %c0_i32 : i32, i32
  }
  func.func @transform_1(%arg0: i32) -> (i32, i32) {
    %c0_i32 = arith.constant 0 : i32
    %c0_i32_0 = arith.constant 0 : i32
    %c0_i32_1 = arith.constant 0 : i32
    return %c0_i32, %c0_i32_0 : i32, i32
  }
  func.func @transform_2(%arg0: i32) -> (i32, i32) {
    %c0_i32 = arith.constant 0 : i32
    %c0_i32_0 = arith.constant 0 : i32
    %c0_i32_1 = arith.constant 0 : i32
    return %c0_i32, %c0_i32_0 : i32, i32
  }
  func.func @transform_3(%arg0: i32) -> (i32, i32) {
    %c0_i32 = arith.constant 0 : i32
    %c0_i32_0 = arith.constant 0 : i32
    %c0_i32_1 = arith.constant 0 : i32
    return %c0_i32, %c0_i32_0 : i32, i32
  }
  func.func @transform_4(%arg0: i32) -> (i32, i32) {
    %c0_i32 = arith.constant 0 : i32
    %c0_i32_0 = arith.constant 0 : i32
    %c0_i32_1 = arith.constant 0 : i32
    return %c0_i32, %c0_i32_0 : i32, i32
  }
  func.func @transform_5(%arg0: i32) -> (i32, i32) {
    %c0_i32 = arith.constant 0 : i32
    %c0_i32_0 = arith.constant 0 : i32
    %c0_i32_1 = arith.constant 0 : i32
    return %c0_i32, %c0_i32_0 : i32, i32
  }
  func.func @transform_6(%arg0: i32) -> (i32, i32) {
    %c0_i32 = arith.constant 0 : i32
    %c0_i32_0 = arith.constant 0 : i32
    %c0_i32_1 = arith.constant 0 : i32
    return %c0_i32, %c0_i32_0 : i32, i32
  }
  func.func @transform_7(%arg0: i32) -> (i32, i32) {
    %c0_i32 = arith.constant 0 : i32
    %c0_i32_0 = arith.constant 0 : i32
    return %arg0, %c0_i32 : i32, i32
  }
}

</mosaic_0001>

<bundles_post_ra>
// kernel: encoder_forward.1
= control target key start
LH: loop header
LB: loop body
LE: loop exit
PB: predicated region body
PF: predicated region fallthrough
CT: control target
= control target key end

     0   :  { %s870_s24 = smov 0   ;;  %s978_s0 = inlined_call_operand.vmem [shape: bf16[64,32], index: 0, kind: input, shape index: {}]   ;;  %s979_s1 = inlined_call_operand.vmem [shape: bf16[32,128], index: 1, kind: input, shape index: {}]   ;;  %s980_s2 = inlined_call_operand.vmem [shape: f32[1,128], index: 2, kind: input, shape index: {}]   ;;  %s981_s3 = inlined_call_operand.vmem [shape: bf16[128,128], index: 3, kind: input, shape index: {}]   ;;  %s982_s4 = inlined_call_operand.vmem [shape: f32[1,128], index: 4, kind: input, shape index: {}]   ;;  %s983_s5 = inlined_call_operand.vmem [shape: bf16[128,16], index: 5, kind: input, shape index: {}]   ;;  %s984_s6 = inlined_call_operand.vmem [shape: f32[1,16], index: 6, kind: input, shape index: {}]   ;;  %s985_s7 = inlined_call_operand.vmem [shape: f32[64,16], index: 7, kind: output, shape index: {}]  }
   0x1 LB: > { %s680_s25 = sadd.s32 4294967295, %s826_s24   ;;  %p684_p0 = scmp.ge.s32.totalorder %s826_s24, 1  ;;  %s826_s24 = sphi %s870_s24, %s17_s24  }
   0x2   : > { %p238_p1 = scmp.lt.s32.totalorder %s826_s24, 5 }
   0x4   : > { %p239_p2 = pnand %p684_p0, %p238_p1 }
   0x5   : > { %v793_v0 = vld [vmem:[%s979_s1] sm:$0xff] (!%p239_p2)   ;;  %v828_v1 = vmov (!%p239_p2), 0.0   ;;  %v794_v2 = vld [vmem:[%s979_s1 + $0x8] sm:$0xff] (!%p239_p2)   ;;  %vm829_vm0 = vmmov (!%p239_p2), 0   ;;  %s685_s30 = sshll.u32 (!%p239_p2), %s680_s25, 1  ;;  %vm313_vm1 = vcmask (!%p239_p2), 261120   ;;  %v616_v56 = vlaneseq (!%p239_p2) }
   0x6   : > { %242 = sbr.rel (%p239_p2) target bundleno = 707 (0x2c3), region = 48  ;;  %735 = vmatprep.subr.bf16.mxu0 (!%p239_p2), %v828_v1  ;;  %743 = vmatprep.subr.bf16.mxu1 (!%p239_p2), %v828_v1  ;;  %p271_p3 = scmp.lt.s32.totalorder (!%p239_p2), %s685_s30, 7  ;;  %v796_v3 = vld [vmem:[%s981_s3] sm:$0xff] (!%p239_p2)   ;;  %v797_v4 = vld [vmem:[%s981_s3 + $0x8] sm:$0xff] (!%p239_p2)   ;;  %v798_v5 = vld [vmem:[%s981_s3 + $0x10] sm:$0xff] (!%p239_p2)   ;;  %vm621_vm4 = vcmask (!%p239_p2), 130048  }
   0x7   : > { %736 = vmatpush3.bf16.msra.mxu0 (!%p239_p2), %v793_v0  ;;  %739 = vmatprep.mubr.msk.bf16.mxu0 (!%p239_p2), %vm829_vm0, %v828_v1  ;;  %v799_v7 = vld [vmem:[%s981_s3 + $0x18] sm:$0xff] (!%p239_p2)   ;;  %v800_v8 = vld [vmem:[%s981_s3 + $0x20] sm:$0xff] (!%p239_p2)   ;;  %v801_v9 = vld [vmem:[%s981_s3 + $0x28] sm:$0xff] (!%p239_p2)   ;;  %v617_v60 = vand.u32 (!%p239_p2), 127, %v616_v56 }
   0x8   : > { %737 = vmatprep.subr.bf16.mxu0 (!%p239_p2), %v828_v1  ;;  %759 = vmatprep.mubr.msk.bf16.mxu1 (!%p239_p2), %vm829_vm0, %v828_v1  ;;  %v802_v10 = vld [vmem:[%s981_s3 + $0x30] sm:$0xff] (!%p239_p2)   ;;  %v803_v11 = vld [vmem:[%s981_s3 + $0x38] sm:$0xff] (!%p239_p2)   ;;  %v804_v12 = vld [vmem:[%s983_s5] sm:$0xff] (!%p239_p2)  }
   0x9   : > { %744 = vmatpush3.bf16.msra.mxu1 (!%p239_p2), %v796_v3  ;;  %v805_v13 = vld [vmem:[%s983_s5 + $0x8] sm:$0xff] (!%p239_p2)   ;;  %v806_v14 = vld [vmem:[%s983_s5 + $0x10] sm:$0xff] (!%p239_p2)   ;;  %v807_v15 = vld [vmem:[%s983_s5 + $0x18] sm:$0xff] (!%p239_p2)   ;;  %vm618_vm3 = vcmp.ge.s32.totalorder (!%p239_p2), %v617_v60, 8 }
   0xa   : > { %745 = vmatprep.subr.bf16.mxu1 (!%p239_p2), %v828_v1  ;;  %v808_v16 = vld [vmem:[%s983_s5 + $0x20] sm:$0xff] (!%p239_p2)   ;;  %v809_v17 = vld [vmem:[%s983_s5 + $0x28] sm:$0xff] (!%p239_p2)   ;;  %v810_v28 = vld [vmem:[%s983_s5 + $0x30] sm:$0xff] (!%p239_p2)  }
   0xb   : > { %738 = vmatpush3.bf16.msra.mxu0 (!%p239_p2), %v794_v2  ;;  %v689_v18 = vld [vmem:[%s980_s2] ss:$0 sm:$0xff] (!%p239_p2)  ;;  %v811_v29 = vld [vmem:[%s983_s5 + $0x38] sm:$0xff] (!%p239_p2)  }
   0xc   : > { %763 = vmatprep.subr.bf16.mxu0 (!%p239_p2), %v828_v1  ;;  %v694_v30 = vld [vmem:[%s982_s4] ss:$0 sm:$0xff] (!%p239_p2) }
   0xd   : > { %s987_s30 = smov (!%p271_p3, %s685_s30), 7  ;;  %746 = vmatpush3.bf16.msra.mxu1 %v797_v4  ;;  %v703_v40 = vld [vmem:[%s984_s6] ss:$0 sm:$0xff] }
   0xe   : > { %s686_s12 = sshll.u32 %s987_s30, 2  ;;  %747 = vmatprep.subr.bf16.mxu1 %v828_v1  ;;  %s688_s8 = sshll.u32 %s987_s30, 3 }
   0xf   : > { %s274_s15 = scalar_lea.vmem %s978_s0, %s686_s12  ;;  %s280_s11 = scalar_lea.vmem %s985_s7, %s688_s8 }
  0x10   : > { %v795_v6 = vld [vmem:[%s274_s15] sm:$0xff]  }
  0x11   : > { %740 = vmatmul.mubr.msk.bf16.vlgmr.msra.gmra.mrb[0].mxu0 %vm313_vm1, %v795_v6  ;;  %748 = vmatpush3.bf16.msra.mxu1 %v798_v5 }
  0x12   : > { %779 = vmatprep.mubr.msk.bf16.mxu0 %vm829_vm0, %v828_v1  ;;  %749 = vmatprep.subr.bf16.mxu1 %v828_v1 }
  0x13   : > { %764 = vmatpush3.bf16.msra.mxu0 %v804_v12 }
  0x14   : > { %765 = vmatprep.subr.bf16.mxu0 %v828_v1 }
  0x15   : > { %750 = vmatpush3.bf16.msra.mxu1 %v799_v7 }
  0x16   : > { %751 = vmatprep.subr.bf16.mxu1 %v828_v1 }
  0x17   : > { %766 = vmatpush3.bf16.msra.mxu0 %v805_v13 }
  0x18   : > { %767 = vmatprep.subr.bf16.mxu0 %v828_v1 }
  0x19   : > { %752 = vmatpush3.bf16.msra.mxu1 %v800_v8 }
  0x1a   : > { %753 = vmatprep.subr.bf16.mxu1 %v828_v1 }
  0x1b   : > { %768 = vmatpush3.bf16.msra.mxu0 %v806_v14 }
  0x1c   : > { %769 = vmatprep.subr.bf16.mxu0 %v828_v1 }
  0x1d   : > { %754 = vmatpush3.bf16.msra.mxu1 %v801_v9 }
  0x1e   : > { %755 = vmatprep.subr.bf16.mxu1 %v828_v1 }
  0x1f   : > { %770 = vmatpush3.bf16.msra.mxu0 %v807_v15 }
  0x20   : > { %771 = vmatprep.subr.bf16.mxu0 %v828_v1 }
  0x21   : > { %756 = vmatpush3.bf16.msra.mxu1 %v802_v10 }
  0x22   : > { %757 = vmatprep.subr.bf16.mxu1 %v828_v1 }
  0x23   : > { %772 = vmatpush3.bf16.msra.mxu0 %v808_v16 }
  0x24   : > { %773 = vmatprep.subr.bf16.mxu0 %v828_v1 }
  0x25   : > { %758 = vmatpush3.bf16.msra.mxu1 %v803_v11 }
  0x27   : > { %774 = vmatpush3.bf16.msra.mxu0 %v809_v17 }
  0x28   : > { %775 = vmatprep.subr.bf16.mxu0 %v828_v1 }
  0x2b   : > { %776 = vmatpush3.bf16.msra.mxu0 %v810_v28 }
  0x2c   : > { %777 = vmatprep.subr.bf16.mxu0 %v828_v1 }
  0x2f   : > { %778 = vmatpush3.bf16.msra.mxu0 %v811_v29 }
  0xe4   : > { %v351_v19 = vpop.f32.mrb[0].mxu0 }
  0xe5   : > { %v352_v20 = vadd.f32 %v689_v18, %v351_v19  ;;  %v741_v21 = vpop.f32.mrb[1].mxu0 }
  0xe6   : > { %v354_v22 = vpop.f32.mrb[2].mxu0 }
  0xe7   : > { %v355_v23 = vadd.f32 %v689_v18, %v354_v22  ;;  %v742_v24 = vpop.f32.mrb[3].mxu0  ;;  %v358_v25 = vmax.f32 %v352_v20, 0.0 }
  0xe9   : > { %v359_v26 = vmax.f32 %v355_v23, 0.0 }
  0xeb   : > { %v360_v27 = vpack.c.bf16 %v359_v26, %v358_v25 }
  0xed   : > { %760 = vmatmul.mubr.bf16.vlgmr.msra.gmra.mrb[0].mxu1 %v360_v27 }
 0x1c0   : > { %v466_v31 = vpop.f32.mrb[0].mxu1 }
 0x1c1   : > { %v467_v32 = vadd.f32 %v694_v30, %v466_v31  ;;  %v761_v33 = vpop.f32.mrb[1].mxu1 }
 0x1c2   : > { %v469_v34 = vpop.f32.mrb[2].mxu1 }
 0x1c3   : > { %v470_v35 = vadd.f32 %v694_v30, %v469_v34  ;;  %v762_v36 = vpop.f32.mrb[3].mxu1  ;;  %v473_v37 = vmax.f32 %v467_v32, 0.0 }
 0x1c5   : > { %v474_v38 = vmax.f32 %v470_v35, 0.0 }
 0x1c7   : > { %v475_v39 = vpack.c.bf16 %v474_v38, %v473_v37 }
 0x1c9   : > { %780 = vmatmul.mubr.bf16.vlgmr.msra.gmra.mrb[4].mxu0 %v475_v39 }
 0x29c   : > { %v581_v41 = vpop.f32.mrb[4].mxu0 }
 0x29d   : > { %v582_v42 = vadd.f32 %v703_v40, %v581_v41  ;;  %v781_v43 = vpop.f32.mrb[5].mxu0 }
 0x29e   : > { %v584_v44 = vpop.f32.mrb[6].mxu0 }
 0x29f   : > { %v590_v45 = vmin.f32 %v582_v42, 20.0  ;;  %v585_v46 = vadd.f32 %v703_v40, %v584_v44  ;;  %v782_v47 = vpop.f32.mrb[7].mxu0  ;;  %vm588_vm5 = vcmp.gt.f32.partialorder %v582_v42, 20.0 }
 0x2a1   : > { %v592_v48 = vmul.f32 1.442695, %v590_v45  ;;  %v591_v49 = vmin.f32 %v585_v46, 20.0  ;;  %vm589_vm7 = vcmp.gt.f32.partialorder %v585_v46, 20.0 }
 0x2a3   : > { %812 = vpow2.f32 %v592_v48  ;;  %v594_v50 = vmul.f32 1.442695, %v591_v49 }
 0x2a5   : > { %814 = vpow2.f32 %v594_v50 }
 0x2ad   : > { %v813_v51 = vpop.eup %812 }
 0x2ae   : > { %v596_v52 = vadd.f32 1.0, %v813_v51  ;;  %v599_v55 = vmul.f32 -0.5, %v813_v51  ;;  %v602_v59 = vand.u32 2147483647, %v813_v51 }
 0x2af   : > { %v815_v53 = vpop.eup %814 }
 0x2b0   : > { %816 = vlog2.f32 %v596_v52  ;;  %v605_v54 = vadd.f32 1.0, %v815_v53  ;;  %v608_v57 = vmul.f32 -0.5, %v815_v53  ;;  %v600_v58 = vadd.f32 1.0, %v599_v55 }
 0x2b1   : > { %v611_v63 = vand.u32 2147483647, %v815_v53  ;;  %vm603_vm2 = vcmp.lt.f32.partialorder %v602_v59, 0.0004427343 }
 0x2b2   : > { %818 = vlog2.f32 %v605_v54  ;;  %v609_v61 = vadd.f32 1.0, %v608_v57  ;;  %v601_v1 = vmul.f32 %v813_v51, %v600_v58 }
 0x2b3   : > { %vm612_vm6 = vcmp.lt.f32.partialorder %v611_v63, 0.0004427343 }
 0x2b4   : > { %v610_v5 = vmul.f32 %v815_v53, %v609_v61 }
 0x2ba   : > { %v817_v62 = vpop.eup %816 }
 0x2bb   : > { %v598_v0 = vmul.f32 0.6931472, %v817_v62 }
 0x2bc   : > { %v819_v2 = vpop.eup %818 }
 0x2bd   : > { %v604_v3 = vsel %vm603_vm2, %v601_v1, %v598_v0  ;;  %v607_v4 = vmul.f32 0.6931472, %v819_v2 }
 0x2be   : > { %v614_v6 = vsel %vm588_vm5, %v582_v42, %v604_v3 }
 0x2bf   : > { %v619_v7 = vsel %vm618_vm3, %v614_v6, %v582_v42  ;;  %v613_v8 = vsel %vm612_vm6, %v610_v5, %v607_v4 }
 0x2c0   : > { %622 = vst.msk [vmem:[%s280_s11] sm:$0xff] %vm621_vm4, %v619_v7  ;;  %v615_v9 = vsel %vm589_vm7, %v585_v46, %v613_v8 }
 0x2c1   : > { %v620_v10 = vsel %vm618_vm3, %v615_v9, %v585_v46 }
 0x2c2   : > { %623 = vst.msk [vmem:[%s280_s11 + $0x8] sm:$0xff] %vm621_vm4, %v620_v10 }
 0x2c3 PF: > { %s17_s24 = sadd.s32 1, %s826_s24  }
 0x2c4   : > { %p14_p4 = scmp.ge.s32.totalorder %s17_s24, 6  }
 0x2c6   :  { %16 = sbr.rel (!%p14_p4) target bundleno = 1 (0x1), region = 78 }

</bundles_post_ra>
